<compile_context>
chip_gen: v7x
topology: tpu7x:2x2x1
jax: 0.10.0
libtpu: 0.0.40
codegen_flags: <defaults>
</compile_context>

<pallas_src>
import functools
import math

import jax
import jax.numpy as jnp
import numpy as np
from jax import lax
from jax.experimental import pallas as pl
from jax.experimental.pallas import tpu as pltpu


# ---------------------------------------------------------------------------
# View
# ---------------------------------------------------------------------------
def _resolve_view_shape(x_shape, shape):
    total = int(np.prod(x_shape))
    shape = list(shape)
    if -1 in shape:
        pos = shape.index(-1)
        rest = int(np.prod([s for s in shape if s != -1], dtype=np.int64))
        shape[pos] = total // max(rest, 1)
    shape = tuple(int(s) for s in shape)
    assert int(np.prod(shape)) == total, "view shape must preserve element count"
    return shape


def pallas_view(x, *shape):
    """nn.Module View(*shape).forward(x).

    torch .view() is a metadata-only op on a contiguous tensor; the
    highest-value change from the perf review is to keep it that way:
    jnp.reshape of a row-major array is free in XLA (zero HBM traffic)."""
    return jnp.reshape(x, _resolve_view_shape(x.shape, shape))


def _view_copy_kernel(x_ref, o_ref):
    o_ref[...] = x_ref[...]


def pallas_view_materialized(x, *shape, tile_bytes=2 << 20):
    """View realized as an explicit Pallas HBM->HBM copy (only useful when a
    freshly materialized / donatable buffer is wanted).

    The copy runs on a flat lane-dense 2D slab: last dim a multiple of 128
    (up to 1024 -> unmasked vst), ~tile_bytes per grid step, one Blocked
    "parallel" grid axis with contiguous block offsets."""
    out_shape = _resolve_view_shape(x.shape, shape)
    total = int(np.prod(out_shape))
    itemsize = jnp.dtype(x.dtype).itemsize

    cols = 0
    for c in (1024, 512, 256, 128):
        if total % c == 0:
            cols = c
            break
    if cols == 0:
        # TODO(synk): views whose flat size is not 128-lane divisible (or that
        # re-tile the trailing sublane/lane dims) stay a metadata-only reshape.
        return jnp.reshape(x, out_shape)
    rows = total // cols

    # Row block: ~tile_bytes per tile, multiple of 8 sublanes (or full extent).
    rb = max(tile_bytes // (cols * itemsize), 8)
    rb -= rb % 8
    rb = min(rb, rows)
    if rb < 8:
        rb = rows                      # full-extent block is always legal
    grid = (pl.cdiv(rows, rb),)

    # Double-buffered input + output tiles, plus headroom; stays below v7x's
    # 64 MiB physical VMEM.
    tile_b = rb * cols * itemsize
    vmem_limit = int(min(max(16 << 20, 4 * tile_b + (2 << 20)), 48 << 20))

    x2 = jnp.reshape(x, (rows, cols))          # metadata-only
    y2 = pl.pallas_call(
        _view_copy_kernel,
        out_shape=jax.ShapeDtypeStruct((rows, cols), x.dtype),
        grid=grid,
        in_specs=[pl.BlockSpec((rb, cols), lambda i: (i, 0))],
        out_specs=pl.BlockSpec((rb, cols), lambda i: (i, 0)),
        compiler_params=pltpu.CompilerParams(
            dimension_semantics=("parallel",),
            vmem_limit_bytes=vmem_limit,
        ),
    )(x2)
    return jnp.reshape(y2, out_shape)          # metadata-only


# ---------------------------------------------------------------------------
# AngleLinear (SphereFace angular-margin linear), updated per perf review
# ---------------------------------------------------------------------------
_PI_CONST = 3.14159265  # constant used by the PyTorch module (not math.pi)


def _cos_m_theta(c, m):
    # Chebyshev cos(m*theta) in Horner form.
    if m == 0:
        return jnp.ones_like(c)
    if m == 1:
        return c
    c2 = c * c
    if m == 2:
        return 2.0 * c2 - 1.0
    if m == 3:
        return (4.0 * c2 - 3.0) * c
    if m == 4:
        return (8.0 * c2 - 8.0) * c2 + 1.0
    if m == 5:
        return ((16.0 * c2 - 20.0) * c2 + 5.0) * c
    raise ValueError("m must be in 0..5")


def angle_linear_kernel(x_ref, w_ref, invx_ref, xlen_ref, cos_ref, phi_ref, *, m):
    x = x_ref[...].astype(jnp.float32)          # (B, D)   resident
    w = w_ref[...].astype(jnp.float32)          # (D, TN)  streamed column tile

    # renorm(2,1,1e-5).mul(1e5) cancels exactly against the wlen divide
    # (ww/||ww|| == w/||w||): one column reduction + one EUP rsqrt per tile.
    sw = jnp.sum(w * w, axis=0, keepdims=True)          # (1, TN)  XLU reduce
    inv_wnorm = lax.rsqrt(jnp.maximum(sw, 1e-30))       # EUP

    dot = jnp.dot(x, w, preferred_element_type=jnp.float32)   # (B, TN) on MXU
    cos_theta = jnp.clip(dot * invx_ref[...] * inv_wnorm, -1.0, 1.0)

    cos_m_theta = _cos_m_theta(cos_theta, m)

    # k = floor(m*acos(cos_theta)/PI), acos-free: count monotone threshold
    # crossings (acos is monotone decreasing).
    k = jnp.zeros_like(cos_theta)
    for j in range(1, m + 1):
        k = k + (cos_theta <= math.cos(j * _PI_CONST / m)).astype(jnp.float32)

    sign = 1.0 - 2.0 * jnp.mod(k, 2.0)                  # (-1)**k
    phi_theta = sign * cos_m_theta - 2.0 * k

    xlen = xlen_ref[...]                                # (B, 1) resident
    cos_ref[...] = (cos_theta * xlen).astype(cos_ref.dtype)
    phi_ref[...] = (phi_theta * xlen).astype(phi_ref.dtype)
    # NOTE: for a partial last N tile the padded weight columns are
    # unspecified; anything produced there stays column-local and the
    # corresponding out-of-range output writes are dropped, so no mask needed.


def angle_linear(x, weight, m=4, tn=2048):
    B, D = x.shape
    D2, N = weight.shape
    assert D == D2
    tn = min(tn, N)
    grid = (pl.cdiv(N, tn),)

    # Row norms of the resident x: computed ONCE here (not once per N tile)
    # and passed as tiny (B,1) resident inputs.  This keeps the N axis
    # "parallel" (megacore-safe on v7x), unlike a pl.when(pid==0) scratch init.
    xf = x.astype(jnp.float32)
    sx = jnp.sum(xf * xf, axis=1, keepdims=True)        # (B, 1)
    inv_xlen = lax.rsqrt(jnp.maximum(sx, 1e-30))
    xlen = sx * inv_xlen                                # == sqrt(sx)

    # VMEM budget: double-buffered weight tile + resident x/norms + two
    # double-buffered output tiles; capped at ~75% of physical VMEM (v7x: 64MiB).
    itemsize = jnp.dtype(x.dtype).itemsize
    need = (2 * D * tn * jnp.dtype(weight.dtype).itemsize
            + 2 * B * D * itemsize
            + 4 * B * 4
            + 2 * 2 * B * tn * itemsize
            + (2 << 20))
    try:
        phys_vmem = int(pltpu.get_tpu_info().vmem_capacity_bytes)
    except Exception:
        phys_vmem = 128 << 20
    vmem_limit = int(max(16 << 20, min(2 * need, (phys_vmem * 3) // 4)))

    kernel = functools.partial(angle_linear_kernel, m=m)
    cos_t, phi_t = pl.pallas_call(
        kernel,
        out_shape=(
            jax.ShapeDtypeStruct((B, N), x.dtype),
            jax.ShapeDtypeStruct((B, N), x.dtype),
        ),
        grid=grid,
        in_specs=[
            pl.BlockSpec((B, D), lambda j: (0, 0)),      # x: resident, full D
            # weight: column tile.  pipeline_mode=pl.Buffered(3) is a further
            # v7x option once per-tile DMA gets short; left at default depth.
            pl.BlockSpec((D, tn), lambda j: (0, j)),
            pl.BlockSpec((B, 1), lambda j: (0, 0)),      # inv_xlen: resident
            pl.BlockSpec((B, 1), lambda j: (0, 0)),      # xlen: resident
        ],
        out_specs=(
            pl.BlockSpec((B, tn), lambda j: (0, j)),     # lane-dense outputs
            pl.BlockSpec((B, tn), lambda j: (0, j)),
        ),
        compiler_params=pltpu.CompilerParams(
            dimension_semantics=("parallel",),
            vmem_limit_bytes=vmem_limit,
        ),
    )(x, weight, inv_xlen, xlen)
    return cos_t, phi_t


def init_angle_linear_weight(key, in_features, out_features):
    # Mirrors __init__: uniform_(-1, 1).renorm_(2, 1, 1e-5).mul_(1e5)
    w = jax.random.uniform(key, (in_features, out_features),
                           dtype=jnp.float32, minval=-1.0, maxval=1.0)
    wnorm = jnp.sqrt(jnp.sum(w * w, axis=0, keepdims=True))
    scale = jnp.where(wnorm > 1e-5, 1e-5 / (wnorm + 1e-7), 1.0) * 1e5
    return w * scale


def angle_linear_ref(x, weight, m=4):
    # Pure-JAX reference with the original (un-simplified) math.
    wnorm = jnp.sqrt(jnp.sum(weight * weight, axis=0, keepdims=True))
    scale = jnp.where(wnorm > 1e-5, 1e-5 / (wnorm + 1e-7), 1.0) * 1e5
    ww = weight * scale
    xlen = jnp.sqrt(jnp.sum(x * x, axis=1, keepdims=True))
    wlen = jnp.sqrt(jnp.sum(ww * ww, axis=0, keepdims=True))
    cos_theta = jnp.clip(x @ ww / xlen / wlen, -1.0, 1.0)
    cos_m_theta = _cos_m_theta(cos_theta, m)
    k = jnp.zeros_like(cos_theta)
    for j in range(1, m + 1):
        k = k + (cos_theta <= math.cos(j * _PI_CONST / m)).astype(jnp.float32)
    phi_theta = (1.0 - 2.0 * jnp.mod(k, 2.0)) * cos_m_theta - 2.0 * k
    return cos_theta * xlen, phi_theta * xlen


if __name__ == "__main__":
    key = jax.random.PRNGKey(0)
    k1, k2, k3 = jax.random.split(key, 3)

    # --- View: (2, 4, 16, 16) -> View(-1, 16, 16) => (8, 16, 16) ------------
    xv = jax.random.normal(k1, (2, 4, 16, 16), dtype=jnp.float32)
    ref_v = np.asarray(jnp.reshape(xv, (8, 16, 16)))

    yv = pallas_view(xv, -1, 16, 16)                     # metadata-only default
    jax.block_until_ready(yv)
    assert yv.shape == (8, 16, 16)
    np.testing.assert_array_equal(np.asarray(yv), ref_v)

    yv_mat = pallas_view_materialized(xv, -1, 16, 16)    # Pallas copy path
    jax.block_until_ready(yv_mat)
    assert yv_mat.shape == (8, 16, 16)
    np.testing.assert_array_equal(np.asarray(yv_mat), ref_v)

    # --- AngleLinear (same spherenet.py), updated per perf review -----------
    B, IN_F, OUT_F, M = 8, 64, 128, 4
    xa = jax.random.normal(k2, (B, IN_F), dtype=jnp.float32)
    wa = init_angle_linear_weight(k3, IN_F, OUT_F)

    cos_theta, phi_theta = angle_linear(xa, wa, m=M)
    jax.block_until_ready((cos_theta, phi_theta))

    cos_ref, phi_ref = angle_linear_ref(xa, wa, m=M)
    cos_ok = np.isclose(np.asarray(cos_theta), np.asarray(cos_ref),
                        rtol=1e-3, atol=1e-3)
    phi_ok = np.isclose(np.asarray(phi_theta), np.asarray(phi_ref),
                        rtol=1e-3, atol=1e-3)
    assert cos_ok.mean() > 0.99, "cos_theta mismatch vs reference"
    assert phi_ok.mean() > 0.99, "phi_theta mismatch vs reference"

    print("KERNEL_OK")
</pallas_src>

<mosaic_0001>
module attributes {stable_mosaic.version = 11 : i64} {
  func.func @_view_copy_kernel(%arg0: i32, %arg1: memref<2x1024xf32, #tpu.memory_space<vmem>>, %arg2: memref<2x1024xf32, #tpu.memory_space<vmem>>) attributes {dimension_semantics = [#tpu.dimension_semantics<parallel>], iteration_bounds = array<i64: 1>, scalar_prefetch = 0 : i64, scratch_operands = 0 : i64, tpu.core_type = #tpu.core_type<tc>, window_params = [{transform_indices = @transform_0, window_bounds = array<i64: 2, 1024>}, {transform_indices = @transform_1, window_bounds = array<i64: 2, 1024>}]} {
    %c0 = arith.constant 0 : index
    %c0_0 = arith.constant 0 : index
    %0 = vector.load %arg1[%c0, %c0_0] : memref<2x1024xf32, #tpu.memory_space<vmem>>, vector<2x1024xf32>
    %c0_1 = arith.constant 0 : index
    %c0_2 = arith.constant 0 : index
    %1 = vector.load %arg2[%c0_1, %c0_2] : memref<2x1024xf32, #tpu.memory_space<vmem>>, vector<2x1024xf32>
    tpu.vector_store %arg2[%c0_1, %c0_2], %0 {strides = array<i32>} : memref<2x1024xf32, #tpu.memory_space<vmem>>, vector<2x1024xf32>,
    return
  }
  func.func @transform_0(%arg0: i32) -> (i32, i32) {
    %c0_i32 = arith.constant 0 : i32
    %c0_i32_0 = arith.constant 0 : i32
    return %arg0, %c0_i32 : i32, i32
  }
  func.func @transform_1(%arg0: i32) -> (i32, i32) {
    %c0_i32 = arith.constant 0 : i32
    %c0_i32_0 = arith.constant 0 : i32
    return %arg0, %c0_i32 : i32, i32
  }
}

</mosaic_0001>

<bundles_post_ra>
// kernel: tpu_custom_call.1
= control target key start
LH: loop header
LB: loop body
LE: loop exit
PB: predicated region body
PF: predicated region fallthrough
CT: control target
= control target key end

     0   :  { %6 = vsyncpa [#allocation3], 0  ;;  %s126_s0 = inlined_call_operand.hbm [shape: f32[2,1024], index: 0, kind: input, shape index: {}]   ;;  %s127_s1 = inlined_call_operand.hbm [shape: f32[2,1024], index: 1, kind: output, shape index: {}]  }
   0x1   :  { %7 = vsyncpa [#allocation4], 0  ;;  %s90_s6 = smov [#allocation2]   ;;  %s42_s10 = scalar_lea.hbm %s126_s0, 256 }
   0x2   :  { %s14_s7 = sshll.u32 %s90_s6, 4  ;;  %p43_p0 = scmp.ne.s32.totalorder %s126_s0, %s42_s10  ;;  %s15_s7 = int_to_ptr.vmem [resolvable:$true] %s14_s7 }
   0x3   :  { %p46_p1 = scmp.lt.u32.totalorder %s42_s10, %s126_s0 }
   0x5   :  { %p48_p2 = pnand %p46_p1, %p43_p0 }
   0x7   :  { %51 = shalt.err (!%p48_p2)
}
   0x8   :  { %s52_s15 = scalar_lea.vmem %s15_s7, 256  ;;  %p57_p4 = scmp.lt.s32.totalorder %s15_s7, %s15_s7 }
   0x9   :  { %p53_p3 = scmp.ne.s32.totalorder %s15_s7, %s52_s15  ;;  %p58_p5 = scmp.lt.s32.totalorder %s52_s15, %s52_s15 }
   0xb   :  { %p59_p6 = por %p58_p5, %p57_p4 }
   0xd   :  { %p60_p7 = pnand %p59_p6, %p53_p3 }
   0xf   :  { %63 = shalt.err (!%p60_p7)
}
  0x10   :  { %17 = dma.hbm_to_vmem [thread:$0]  %s126_s0, 256, %s15_s7, [#allocation3]  }
  0x11   :  { %86 = dma.done.wait [#allocation3], 256  }
  0x12   :  { %87 = vsyncadd [#allocation3], 4294967040  ;;  %s91_s18 = smov [#allocation5]   ;;  %v21_v0 = vld [vmem:[#allocation2] sm:$0xff]  ;;  %v22_v1 = vld [vmem:[#allocation2 + $0x8] sm:$0xff] }
  0x13   :  { %s31_s19 = sshll.u32 %s91_s18, 4  ;;  %23 = vst [vmem:[#allocation5] sm:$0xff] %v21_v0  ;;  %24 = vst [vmem:[#allocation5 + $0x8] sm:$0xff] %v22_v1  ;;  %s32_s19 = int_to_ptr.vmem [resolvable:$true] %s31_s19 }
  0x14   :  { %s64_s20 = scalar_lea.vmem %s32_s19, 256  ;;  %p69_p9 = scmp.lt.s32.totalorder %s32_s19, %s32_s19 }
  0x15   :  { %p65_p8 = scmp.ne.s32.totalorder %s32_s19, %s64_s20  ;;  %p70_p10 = scmp.lt.s32.totalorder %s64_s20, %s64_s20 }
  0x17   :  { %p71_p11 = por %p70_p10, %p69_p9 }
  0x19   :  { %p72_p12 = pnand %p71_p11, %p65_p8 }
  0x1b   :  { %75 = shalt.err (!%p72_p12)
}
  0x1c   :  { %s76_s0 = scalar_lea.hbm %s127_s1, 256 }
  0x1d   :  { %p77_p13 = scmp.ne.s32.totalorder %s127_s1, %s76_s0  ;;  %p80_p0 = scmp.lt.u32.totalorder %s76_s0, %s127_s1 }
  0x1f   :  { %p82_p1 = pnand %p80_p0, %p77_p13 }
  0x21   :  { %85 = shalt.err (!%p82_p1)
}
  0x22   :  { %34 = dma.vmem_to_hbm [thread:$0]  %s32_s19, 256, %s127_s1, [#allocation4]  }
  0x23   :  { %88 = dma.done.wait [#allocation4], 256  }
  0x24   :  { %89 = vsyncadd [#allocation4], 4294967040 }
  0x25   :  { %38 = vsyncpa [#allocation3], 1 }
  0x26   :  { %39 = vsyncpa [#allocation4], 1 }

</bundles_post_ra>
